<compile_context>
chip_gen: v7x
topology: tpu7x:2x2x1
jax: 0.10.0
libtpu: 0.0.40
codegen_flags: <defaults>
</compile_context>

<pallas_src>
import jax
import jax.numpy as jnp
from jax import lax
from jax.experimental import pallas as pl
from jax.experimental.pallas import tpu as pltpu

_LANES = 128


def _round_up(x, m):
    return ((x + m - 1) // m) * m


def _vmem_capacity_bytes():
    try:
        return int(pltpu.get_tpu_info().vmem_capacity_bytes)
    except Exception:
        return 64 * 1024 * 1024  # conservative fallback (v7x per-core budget)


def _pick_tiling(itemsize):
    """Per-generation (row-tile, vmem_limit) choice."""
    vmem = _vmem_capacity_bytes()
    if vmem <= 64 * 1024 * 1024:
        # v7x-class: 64 MiB VMEM, 3.2 TB/s HBM -> 4 MiB f32 blocks, 48 MiB limit
        base_rows, vmem_limit = 8192, 48 * 1024 * 1024
    else:
        # v5e / v6e: 128 MiB VMEM -> 8 MiB f32 blocks, 96 MiB limit
        base_rows, vmem_limit = 16384, 96 * 1024 * 1024
    # keep roughly the same bytes/block for narrower dtypes (bf16 -> 2x rows)
    max_rows = base_rows * max(1, 4 // max(itemsize, 1))
    return max_rows, vmem_limit


def _make_kernel(tm, acc_rows, half, full_blocks, rows_total, needs_mask):
    groups = tm // acc_rows

    def kernel(p_ref, t_ref, out_ref):
        c = pl.program_id(0)  # core / half index ("parallel")
        j = pl.program_id(1)  # row-block index within the half ("arbitrary")

        @pl.when(j == 0)
        def _init():
            out_ref[...] = jnp.zeros_like(out_ref)

        d = p_ref[...].astype(jnp.float32) - t_ref[...].astype(jnp.float32)
        d2 = d * d

        def _accumulate(vals):
            # vals: (tm, 128) f32 -> (acc_rows, 128) per-lane partials.
            # Unrolled vreg adds (ILP = acc_rows/8), then ONE read-modify-write
            # of the resident output block (no per-vreg accumulator traffic).
            part = vals[0:acc_rows, :]
            for g in range(1, groups):
                part = part + vals[g * acc_rows:(g + 1) * acc_rows, :]
            out_ref[...] += part

        if needs_mask:
            blk = c * half + j  # logical (unclamped) global block index

            @pl.when(blk < full_blocks)
            def _full():
                _accumulate(d2)

            @pl.when(blk >= full_blocks)
            def _ragged():
                # Boundary / overflow block: rows past the true row count are
                # garbage (out-of-bounds / duplicated reads) -> zero them out.
                rows_left = rows_total - blk * tm
                row = lax.broadcasted_iota(jnp.int32, (tm, _LANES), 0)
                _accumulate(jnp.where(row < rows_left, d2, 0.0))
        else:
            _accumulate(d2)

    return kernel


def _sum_squared_error(preds, targets):
    """Returns (sum((preds-targets)^2) as f32, true element count)."""
    assert preds.shape == targets.shape
    n_elems = 1
    for dim in preds.shape:
        n_elems *= int(dim)
    assert n_elems > 0

    itemsize = jnp.dtype(preds.dtype).itemsize
    packing = max(1, 4 // max(itemsize, 1)) * 8  # 8 f32 / 16 bf16 / 32 int8
    max_rows, vmem_limit = _pick_tiling(itemsize)

    # Lane-dense (rows, 128) view; a free bitcast-reshape when n_elems % 128 == 0.
    rem = n_elems % _LANES
    rows_total = -(-n_elems // _LANES)

    def _as_rows(x):
        flat = x.reshape(-1)
        if rem:
            # TODO(synk): pads <128 zeros but still materializes one copy of the
            # tensor; never triggers for physioex shapes (T*F multiple of 128).
            flat = jnp.pad(flat, (0, _LANES - rem))
        return flat.reshape(rows_total, _LANES)

    p2 = _as_rows(preds)
    t2 = _as_rows(targets)

    tm = min(max_rows, _round_up(rows_total, packing))
    total_blocks = -(-rows_total // tm)
    full_blocks = rows_total // tm          # blocks fully inside the array

    ncores = 2 if total_blocks >= 2 else 1  # v7x: 2 TCs; harmless elsewhere
    half = -(-total_blocks // ncores)       # blocks handled per core
    needs_mask = (ncores * half) > full_blocks

    # Accumulator block rows: largest of {64,32,16,8} dividing tm (tm % 8 == 0).
    acc_rows = 8
    for cand in (64, 32, 16):
        if tm % cand == 0:
            acc_rows = cand
            break

    if ncores * half == total_blocks:
        def in_map(c, j):
            return (c * half + j, 0)
    else:
        last_blk = total_blocks - 1

        def in_map(c, j):
            # Overflow steps re-read the last real block; their contribution is
            # fully masked to zero inside the kernel.
            return (jnp.minimum(c * half + j, last_blk), 0)

    kernel = _make_kernel(tm, acc_rows, half, full_blocks, rows_total, needs_mask)

    partials = pl.pallas_call(
        kernel,
        out_shape=jax.ShapeDtypeStruct((ncores * acc_rows, _LANES), jnp.float32),
        grid_spec=pltpu.PrefetchScalarGridSpec(
            num_scalar_prefetch=0,
            grid=(ncores, half),
            in_specs=[
                pl.BlockSpec((tm, _LANES), in_map),
                pl.BlockSpec((tm, _LANES), in_map),
            ],
            out_specs=pl.BlockSpec((acc_rows, _LANES), lambda c, j: (c, 0)),
        ),
        compiler_params=pltpu.CompilerParams(
            dimension_semantics=("parallel", "arbitrary"),
            vmem_limit_bytes=vmem_limit,
        ),
    )(p2, t2)

    # Tiny (<=128x128) partial-sum slab -> final scalar reduction in plain XLA.
    return jnp.sum(partials), n_elems


def regression_loss(emb, preds, targets):
    """Pallas equivalent of RegressionLoss.forward: nn.MSELoss()(preds, targets)."""
    del emb  # unused, exactly as in the PyTorch module
    sse, n = _sum_squared_error(preds, targets)
    loss = sse / jnp.float32(n)
    if jnp.issubdtype(preds.dtype, jnp.floating):
        loss = loss.astype(preds.dtype)
    return loss


if __name__ == "__main__":
    # shapes implied by the physioex regression setting:
    # preds/targets: (batch, seq_len, in_channels, T, F); emb: (batch, seq_len, D)
    batch_size, seq_len, in_channels, T, F = 2, 3, 2, 8, 64

    key = jax.random.PRNGKey(0)
    k1, k2, k3 = jax.random.split(key, 3)
    preds = jax.random.normal(k1, (batch_size, seq_len, in_channels, T, F),
                              dtype=jnp.float32)
    targets = jax.random.normal(k2, (batch_size, seq_len, in_channels, T, F),
                                dtype=jnp.float32)
    emb = jax.random.normal(k3, (batch_size, seq_len, 16), dtype=jnp.float32)

    out = regression_loss(emb, preds, targets)
    out = jax.block_until_ready(out)

    # plain-JAX reference check (nn.MSELoss default 'mean' reduction)
    ref = jnp.mean((preds - targets) ** 2)
    assert jnp.allclose(out, ref, rtol=1e-5, atol=1e-6), (out, ref)

    print("KERNEL_OK")
</pallas_src>

<mosaic_0001>
module attributes {stable_mosaic.version = 11 : i64} {
  func.func @kernel(%arg0: i32, %arg1: i32, %arg2: memref<48x128xf32, #tpu.memory_space<vmem>>, %arg3: memref<48x128xf32, #tpu.memory_space<vmem>>, %arg4: memref<16x128xf32, #tpu.memory_space<vmem>>) attributes {dimension_semantics = [#tpu.dimension_semantics<parallel>, #tpu.dimension_semantics<arbitrary>], iteration_bounds = array<i64: 1, 1>, scalar_prefetch = 0 : i64, scratch_operands = 0 : i64, tpu.core_type = #tpu.core_type<tc>, window_params = [{transform_indices = @transform_0, window_bounds = array<i64: 48, 128>}, {transform_indices = @transform_1, window_bounds = array<i64: 48, 128>}, {transform_indices = @transform_2, window_bounds = array<i64: 16, 128>}]} {
    %c0_i32 = arith.constant 0 : i32
    %0 = arith.cmpi eq, %arg1, %c0_i32 : i32
    %1 = arith.extui %0 : i1 to i32
    %c0_i32_0 = arith.constant 0 : i32
    %2 = arith.cmpi ne, %1, %c0_i32_0 : i32
    scf.if %2 {
      %cst = arith.constant 0.000000e+00 : f32
      %15 = vector.broadcast %cst : f32 to vector<16x128xf32>
      %c0_8 = arith.constant 0 : index
      %c0_9 = arith.constant 0 : index
      %16 = vector.load %arg4[%c0_8, %c0_9] : memref<16x128xf32, #tpu.memory_space<vmem>>, vector<16x128xf32>
      tpu.vector_store %arg4[%c0_8, %c0_9], %15 {strides = array<i32>} : memref<16x128xf32, #tpu.memory_space<vmem>>, vector<16x128xf32>,
    } else {
    }
    %c0 = arith.constant 0 : index
    %c0_1 = arith.constant 0 : index
    %3 = vector.load %arg2[%c0, %c0_1] : memref<48x128xf32, #tpu.memory_space<vmem>>, vector<48x128xf32>
    %c0_2 = arith.constant 0 : index
    %c0_3 = arith.constant 0 : index
    %4 = vector.load %arg3[%c0_2, %c0_3] : memref<48x128xf32, #tpu.memory_space<vmem>>, vector<48x128xf32>
    %5 = arith.subf %3, %4 : vector<48x128xf32>
    %6 = arith.mulf %5, %5 : vector<48x128xf32>
    %7 = vector.extract_strided_slice %6 {offsets = [0, 0], sizes = [16, 128], strides = [1, 1]} : vector<48x128xf32> to vector<16x128xf32>
    %8 = vector.extract_strided_slice %6 {offsets = [16, 0], sizes = [16, 128], strides = [1, 1]} : vector<48x128xf32> to vector<16x128xf32>
    %9 = arith.addf %7, %8 : vector<16x128xf32>
    %10 = vector.extract_strided_slice %6 {offsets = [32, 0], sizes = [16, 128], strides = [1, 1]} : vector<48x128xf32> to vector<16x128xf32>
    %11 = arith.addf %9, %10 : vector<16x128xf32>
    %c0_4 = arith.constant 0 : index
    %c0_5 = arith.constant 0 : index
    %12 = vector.load %arg4[%c0_4, %c0_5] : memref<16x128xf32, #tpu.memory_space<vmem>>, vector<16x128xf32>
    %13 = arith.addf %12, %11 : vector<16x128xf32>
    %c0_6 = arith.constant 0 : index
    %c0_7 = arith.constant 0 : index
    %14 = vector.load %arg4[%c0_6, %c0_7] : memref<16x128xf32, #tpu.memory_space<vmem>>, vector<16x128xf32>
    tpu.vector_store %arg4[%c0_6, %c0_7], %13 {strides = array<i32>} : memref<16x128xf32, #tpu.memory_space<vmem>>, vector<16x128xf32>,
    return
  }
  func.func @transform_0(%arg0: i32, %arg1: i32) -> (i32, i32) {
    %c1_i32 = arith.constant 1 : i32
    %0 = arith.muli %arg0, %c1_i32 : i32
    %1 = arith.addi %0, %arg1 : i32
    %c0_i32 = arith.constant 0 : i32
    %c0_i32_0 = arith.constant 0 : i32
    return %1, %c0_i32 : i32, i32
  }
  func.func @transform_1(%arg0: i32, %arg1: i32) -> (i32, i32) {
    %c1_i32 = arith.constant 1 : i32
    %0 = arith.muli %arg0, %c1_i32 : i32
    %1 = arith.addi %0, %arg1 : i32
    %c0_i32 = arith.constant 0 : i32
    %c0_i32_0 = arith.constant 0 : i32
    return %1, %c0_i32 : i32, i32
  }
  func.func @transform_2(%arg0: i32, %arg1: i32) -> (i32, i32) {
    %c0_i32 = arith.constant 0 : i32
    %c0_i32_0 = arith.constant 0 : i32
    return %arg0, %c0_i32 : i32, i32
  }
}

</mosaic_0001>

<bundles_post_ra>
// kernel: tpu_custom_call.1
= control target key start
LH: loop header
LB: loop body
LE: loop exit
PB: predicated region body
PF: predicated region fallthrough
CT: control target
= control target key end

     0   :  { %7 = vsyncpa [#allocation3], 0  ;;  %s253_s0 = inlined_call_operand.hbm [shape: f32[48,128], index: 0, kind: input, shape index: {}]   ;;  %s254_s1 = inlined_call_operand.hbm [shape: f32[48,128], index: 1, kind: input, shape index: {}]   ;;  %s255_s2 = inlined_call_operand.hbm [shape: f32[16,128], index: 2, kind: output, shape index: {}]  }
   0x1   :  { %8 = vsyncpa [#allocation6], 0 }
   0x2   :  { %9 = vsyncpa [#allocation4], 0  ;;  %s188_s9 = smov [#allocation2]   ;;  %s116_s13 = scalar_lea.hbm %s253_s0, 768 }
   0x3   :  { %s19_s10 = sshll.u32 %s188_s9, 4  ;;  %p117_p0 = scmp.ne.s32.totalorder %s253_s0, %s116_s13  ;;  %s20_s10 = int_to_ptr.vmem [resolvable:$true] %s19_s10 }
   0x4   :  { %p120_p1 = scmp.lt.u32.totalorder %s116_s13, %s253_s0 }
   0x6   :  { %p122_p2 = pnand %p120_p1, %p117_p0 }
   0x8   :  { %125 = shalt.err (!%p122_p2)
}
   0x9   :  { %s126_s18 = scalar_lea.vmem %s20_s10, 768  ;;  %p131_p4 = scmp.lt.s32.totalorder %s20_s10, %s20_s10 }
   0xa   :  { %p127_p3 = scmp.ne.s32.totalorder %s20_s10, %s126_s18  ;;  %p132_p5 = scmp.lt.s32.totalorder %s126_s18, %s126_s18 }
   0xc   :  { %p133_p6 = por %p132_p5, %p131_p4 }
   0xe   :  { %p134_p7 = pnand %p133_p6, %p127_p3 }
  0x10   :  { %137 = shalt.err (!%p134_p7)
}
  0x11   :  { %s189_s19 = smov 128   ;;  %s190_s20 = smov 8  }
  0x12   :  { %25 = dma.hbm_to_vmem [thread:$0]  %s253_s0, 768, %s20_s10, [#allocation3], %s189_s19, %s189_s19, %s190_s20  }
  0x13   :  { %s191_s23 = smov [#allocation5]   ;;  %s138_s27 = scalar_lea.hbm %s254_s1, 768 }
  0x14   :  { %s35_s24 = sshll.u32 %s191_s23, 4  ;;  %p139_p8 = scmp.ne.s32.totalorder %s254_s1, %s138_s27  ;;  %s36_s24 = int_to_ptr.vmem [resolvable:$true] %s35_s24 }
  0x15   :  { %p142_p9 = scmp.lt.u32.totalorder %s138_s27, %s254_s1 }
  0x17   :  { %p144_p10 = pnand %p142_p9, %p139_p8 }
  0x19   :  { %147 = shalt.err (!%p144_p10)
}
  0x1a   :  { %s148_s4 = scalar_lea.vmem %s36_s24, 768  ;;  %p153_p12 = scmp.lt.s32.totalorder %s36_s24, %s36_s24 }
  0x1b   :  { %p149_p11 = scmp.ne.s32.totalorder %s36_s24, %s148_s4  ;;  %p154_p13 = scmp.lt.s32.totalorder %s148_s4, %s148_s4 }
  0x1d   :  { %p155_p0 = por %p154_p13, %p153_p12 }
  0x1f   :  { %p156_p1 = pnand %p155_p0, %p149_p11 }
  0x21   :  { %159 = shalt.err (!%p156_p1)
}
  0x22   :  { %41 = dma.hbm_to_vmem [thread:$0]  %s254_s1, 768, %s36_s24, [#allocation6], %s189_s19, %s189_s19, %s190_s20  }
  0x23   :  { %182 = dma.done.wait [#allocation3], 768  }
  0x24   :  { %183 = vsyncadd [#allocation3], 4294966528 }
  0x25   :  { %184 = dma.done.wait [#allocation6], 768  }
  0x26   :  { %185 = vsyncadd [#allocation6], 4294966528  ;;  %v58_v0 = vld [vmem:[#allocation2] sm:$0xff]  ;;  %v60_v1 = vld [vmem:[#allocation2 + $0x10] sm:$0xff]  ;;  %s192_s1 = smov [#allocation7]  }
  0x27   :  { %v62_v2 = vld [vmem:[#allocation2 + $0x20] sm:$0xff]  ;;  %v64_v3 = vld [vmem:[#allocation5] sm:$0xff]  ;;  %v59_v9 = vld [vmem:[#allocation2 + $0x8] sm:$0xff]  ;;  %s97_s6 = sshll.u32 %s192_s1, 4  ;;  %s98_s6 = int_to_ptr.vmem [resolvable:$true] %s97_s6 }
  0x28   :  { %v66_v4 = vld [vmem:[#allocation5 + $0x10] sm:$0xff]  ;;  %v68_v5 = vld [vmem:[#allocation5 + $0x20] sm:$0xff]  ;;  %v70_v6 = vsub.f32 %v58_v0, %v64_v3  ;;  %v61_v10 = vld [vmem:[#allocation2 + $0x18] sm:$0xff]  ;;  %s160_s7 = scalar_lea.vmem %s98_s6, 256  ;;  %p165_p3 = scmp.lt.s32.totalorder %s98_s6, %s98_s6 }
  0x29   :  { %v72_v7 = vsub.f32 %v60_v1, %v66_v4  ;;  %v74_v8 = vsub.f32 %v62_v2, %v68_v5  ;;  %v63_v11 = vld [vmem:[#allocation2 + $0x28] sm:$0xff]  ;;  %v65_v12 = vld [vmem:[#allocation5 + $0x8] sm:$0xff]  ;;  %p161_p2 = scmp.ne.s32.totalorder %s98_s6, %s160_s7  ;;  %p166_p4 = scmp.lt.s32.totalorder %s160_s7, %s160_s7 }
  0x2a   :  { %v67_v13 = vld [vmem:[#allocation5 + $0x18] sm:$0xff]  ;;  %v69_v14 = vld [vmem:[#allocation5 + $0x28] sm:$0xff]  ;;  %v76_v15 = vmul.f32 %v70_v6, %v70_v6  ;;  %v71_v18 = vsub.f32 %v59_v9, %v65_v12 }
  0x2b   :  { %v78_v16 = vmul.f32 %v72_v7, %v72_v7  ;;  %v80_v17 = vmul.f32 %v74_v8, %v74_v8  ;;  %v73_v19 = vsub.f32 %v61_v10, %v67_v13  ;;  %v75_v20 = vsub.f32 %v63_v11, %v69_v14  ;;  %p167_p5 = por %p166_p4, %p165_p3 }
  0x2c   :  { %v77_v22 = vmul.f32 %v71_v18, %v71_v18 }
  0x2d   :  { %v82_v21 = vadd.f32 %v78_v16, %v76_v15  ;;  %v79_v23 = vmul.f32 %v73_v19, %v73_v19  ;;  %v81_v24 = vmul.f32 %v75_v20, %v75_v20  ;;  %p168_p6 = pnand %p167_p5, %p161_p2 }
  0x2f   :  { %v84_v25 = vadd.f32 %v82_v21, %v80_v17  ;;  %v83_v26 = vadd.f32 %v79_v23, %v77_v22 }
  0x31   :  { %v85_v27 = vadd.f32 %v83_v26, %v81_v24  ;;  %90 = vst [vmem:[#allocation7] sm:$0xff] %v84_v25 }
  0x33   :  { %91 = vst [vmem:[#allocation7 + $0x8] sm:$0xff] %v85_v27 }
  0x34   :  { %171 = shalt.err (!%p168_p6)
}
  0x35   :  { %s172_s10 = scalar_lea.hbm %s255_s2, 256 }
  0x36   :  { %p173_p7 = scmp.ne.s32.totalorder %s255_s2, %s172_s10  ;;  %p176_p8 = scmp.lt.u32.totalorder %s172_s10, %s255_s2 }
  0x38   :  { %p178_p9 = pnand %p176_p8, %p173_p7 }
  0x3a   :  { %181 = shalt.err (!%p178_p9)
}
  0x3b   :  { %103 = dma.vmem_to_hbm [thread:$0]  %s98_s6, 256, %s255_s2, [#allocation4], %s189_s19, %s189_s19, %s190_s20  }
  0x3c   :  { %186 = dma.done.wait [#allocation4], 256  }
  0x3d   :  { %187 = vsyncadd [#allocation4], 4294967040 }
  0x3e   :  { %107 = vsyncpa [#allocation3], 1 }
  0x3f   :  { %108 = vsyncpa [#allocation6], 1 }
  0x40   :  { %109 = vsyncpa [#allocation4], 1 }

</bundles_post_ra>
